<compile_context>
chip_gen: v7x
topology: tpu7x:2x2x1
jax: 0.10.0
libtpu: 0.0.40
codegen_flags: <defaults>
</compile_context>

<pallas_src>
import math
import functools

import jax
import jax.numpy as jnp
from jax.experimental import pallas as pl
from jax.experimental.pallas import tpu as pltpu

_LANE = 128


def _round_up(n: int, m: int) -> int:
    return ((n + m - 1) // m) * m


def _largest_dividing_tile(total: int, cap: int) -> int:
    """Largest multiple of 128 that divides `total` (itself a multiple of 128)
    and is <= cap.  Guarantees no ragged K block: OOB garbage columns (possibly
    NaN/Inf) would otherwise poison the f32 accumulator."""
    units = total // _LANE
    cap_units = max(1, int(cap) // _LANE)
    best = 1
    for d in range(1, units + 1):
        if units % d == 0 and d <= cap_units:
            best = d
    return best * _LANE


def _vmem_budget():
    """(scoped vmem limit to request, working budget for tile accounting)."""
    try:
        info = pltpu.get_tpu_info()
        vmem_cap = int(getattr(info, "vmem_capacity_bytes", 64 * 1024 * 1024))
    except Exception:
        vmem_cap = 64 * 1024 * 1024  # conservative (v7x per-core) fallback
    vmem_limit = min(int(0.80 * vmem_cap), 100 * 1024 * 1024)
    # Intermediates are now counted explicitly, so only a small slack is kept
    # for Mosaic internal scratch.
    budget = int(0.85 * vmem_limit)
    return vmem_limit, budget


def _select_tiles(M, in_pad, r_pad, out_pad, itemsize, sub, budget):
    """Pick (tm, tk): M-tile rows and K-tile (in_features) columns.

    VMEM usage accounted per the perf review:
      x tile   : 2 * tm * tk * itemsize           (double-buffered stream)
      A slab   : a_bufs * tk * r_pad * itemsize   (1 buf if grid-invariant else 2)
      B slab   : 1 * r_pad * out_pad * itemsize   (grid-invariant, single buffer)
      out tile : 2 * tm * out_pad * itemsize
      acc      : tm * r_pad * 4                    (f32 scratch)
      f32 temps: tm * (r_pad + out_pad) * 4        (xa dot result + pre-cast out)
    """
    f32 = 4
    tm_goal = min(512, _round_up(max(M, 1), sub))

    # --- Phase 1: full-K residency (single K step; A single-buffered). -------
    fixed_full = (in_pad * r_pad + r_pad * out_pad) * itemsize
    per_row_full = (2 * in_pad + 2 * out_pad) * itemsize + (2 * r_pad + out_pad) * f32
    avail = budget - fixed_full
    tm_full = (avail // per_row_full // sub) * sub if avail > 0 else 0

    if tm_full >= min(tm_goal, 256) or in_pad <= _LANE:
        tm = max(sub, min(tm_goal, max(tm_full, sub)))
        return tm, in_pad

    # --- Phase 2: K-blocked over in_features (A double-buffered per K step). -
    tm = tm_goal
    while tm >= sub:
        fixed_kb = (r_pad * out_pad * itemsize
                    + 2 * tm * out_pad * itemsize
                    + tm * (2 * r_pad + out_pad) * f32)
        per_k_col = 2 * (tm + r_pad) * itemsize
        tk_max = (budget - fixed_kb) // per_k_col if budget > fixed_kb else 0
        if tk_max >= _LANE:
            return tm, _largest_dividing_tile(in_pad, tk_max)
        tm -= sub
    # Last resort: smallest sane tiles.
    return sub, _largest_dividing_tile(in_pad, _LANE)


def _lora_kernel(x_ref, a_ref, b_ref, o_ref, acc_ref, *, scaling):
    # x_ref: (tm, tk)  a_ref: (tk, r_pad)  b_ref: (r_pad, out_pad)
    # acc_ref: (tm, r_pad) f32 scratch, accumulated over the K grid axis.
    k = pl.program_id(1)

    @pl.when(k == 0)
    def _():
        acc_ref[...] = jnp.zeros_like(acc_ref)

    # First matmul on the MXU with f32 accumulation across K blocks.
    acc_ref[...] += jnp.dot(x_ref[...], a_ref[...],
                            preferred_element_type=jnp.float32)

    @pl.when(k == pl.num_programs(1) - 1)
    def _():
        # Scale the small (tm, r_pad) intermediate (cheaper than scaling the
        # (tm, out_pad) output), cast to param dtype, second MXU matmul.
        xa = (acc_ref[...] * scaling).astype(b_ref.dtype)
        out = jnp.dot(xa, b_ref[...], preferred_element_type=jnp.float32)
        o_ref[...] = out.astype(o_ref.dtype)


def scaffold_lora_forward(x, lora_A, lora_B, *, alpha=32.0, rank=None, tm=None):
    """x: (..., in_features) -> (..., out_features); matches x @ A @ B * (alpha/rank)."""
    in_features, r = lora_A.shape
    r_b, out_features = lora_B.shape
    assert r == r_b, "lora_A / lora_B rank mismatch"
    if rank is None:
        rank = r
    scaling = float(alpha) / float(rank)

    target_dtype = x.dtype
    lora_A = lora_A.astype(target_dtype)
    lora_B = lora_B.astype(target_dtype)

    lead_shape = x.shape[:-1]
    M = int(math.prod(lead_shape)) if lead_shape else 1
    x2d = x.reshape(M, in_features)

    itemsize = jnp.dtype(target_dtype).itemsize
    sub = max(8, 32 // itemsize)  # sublane multiple: 8 (f32), 16 (bf16), 32 (i8)

    # Lane-dense padding of the feature dims only (never M).
    in_pad = _round_up(in_features, _LANE)
    r_pad = _round_up(r, _LANE)
    out_pad = _round_up(out_features, _LANE)

    vmem_limit, budget = _vmem_budget()

    if tm is None:
        tm, tk = _select_tiles(M, in_pad, r_pad, out_pad, itemsize, sub, budget)
    else:
        tm = max(sub, (int(tm) // sub) * sub)
        tk = in_pad

    # Keep >= ~8 grid steps on the M axis when M is large enough (2 TCs x
    # double-buffer on v7x needs several steps/core for steady-state
    # pipelining), but never shrink below 256 rows (v5e/v6e roofline floor).
    TARGET_STEPS = 8
    if M >= TARGET_STEPS * 256 and tm * TARGET_STEPS > M:
        tm = max(256, ((-(-M // TARGET_STEPS)) // sub) * sub)

    grid_m = pl.cdiv(M, tm)          # ragged last M block: OOB writes masked
    grid_k = in_pad // tk            # tk divides in_pad -> never ragged in K

    # Zero-pad ONLY the feature / lane dims.  K padding MUST be explicit zeros
    # (OOB garbage could be NaN/Inf and NaN*0 would poison the accumulator);
    # M is never padded -- masked-on-write rows are safe.
    if in_pad != in_features:
        x2d = jnp.pad(x2d, ((0, 0), (0, in_pad - in_features)))
    if (in_pad, r_pad) != (in_features, r):
        lora_A = jnp.pad(lora_A, ((0, in_pad - in_features), (0, r_pad - r)))
    if (r_pad, out_pad) != (r, out_features):
        lora_B = jnp.pad(lora_B, ((0, r_pad - r), (0, out_pad - out_features)))

    kernel = functools.partial(_lora_kernel, scaling=scaling)

    def build(single_buffer):
        # Grid-invariant operands are fetched once; single-buffer them to free
        # VMEM for a larger tm.
        a_kwargs = ({"pipeline_mode": pl.Buffered(1)}
                    if (single_buffer and grid_k == 1) else {})
        b_kwargs = {"pipeline_mode": pl.Buffered(1)} if single_buffer else {}
        return pl.pallas_call(
            kernel,
            out_shape=jax.ShapeDtypeStruct((M, out_pad), target_dtype),
            grid_spec=pltpu.PrefetchScalarGridSpec(
                num_scalar_prefetch=0,
                grid=(grid_m, grid_k),
                in_specs=[
                    pl.BlockSpec((tm, tk), lambda i, k: (i, k)),          # x
                    pl.BlockSpec((tk, r_pad), lambda i, k: (k, 0),        # lora_A
                                 **a_kwargs),
                    pl.BlockSpec((r_pad, out_pad), lambda i, k: (0, 0),   # lora_B
                                 **b_kwargs),
                ],
                out_specs=pl.BlockSpec((tm, out_pad), lambda i, k: (i, 0)),
                scratch_shapes=[pltpu.VMEM((tm, r_pad), jnp.float32)],
            ),
            compiler_params=pltpu.CompilerParams(
                dimension_semantics=("parallel", "arbitrary"),
                vmem_limit_bytes=vmem_limit,
            ),
        )

    try:
        out2d = build(True)(x2d, lora_A, lora_B)
    except Exception:
        # Robustness fallback if pl.Buffered(1) single-buffering is rejected by
        # this jax/Mosaic build; semantics are identical, only VMEM use differs.
        out2d = build(False)(x2d, lora_A, lora_B)

    if out_pad != out_features:
        out2d = out2d[:, :out_features]
    return out2d.reshape(*lead_shape, out_features)


if __name__ == "__main__":
    # Small shapes implied by the module: x = (batch, seq, in_features)
    batch, seq = 2, 8
    in_features, out_features, rank, alpha = 32, 32, 16, 32.0

    key = jax.random.PRNGKey(0)
    kx, ka, kb = jax.random.split(key, 3)

    # bf16 activations/params (MXU-native, halves HBM traffic vs f32).
    x = jax.random.normal(kx, (batch, seq, in_features), dtype=jnp.float32).astype(
        jnp.bfloat16
    )

    # lora_A: kaiming_uniform_(a=sqrt(5)) -> uniform(-bound, bound), bound = 1/sqrt(fan_in)
    bound = 1.0 / math.sqrt(in_features)
    lora_A = jax.random.uniform(
        ka, (in_features, rank), minval=-bound, maxval=bound, dtype=jnp.float32
    ).astype(jnp.bfloat16)
    # NOTE: the module initializes lora_B to zeros (output would be all-zero);
    # small deterministic random values are used here to exercise the kernel math.
    lora_B = (
        0.02 * jax.random.normal(kb, (rank, out_features), dtype=jnp.float32)
    ).astype(jnp.bfloat16)

    out = scaffold_lora_forward(x, lora_A, lora_B, alpha=alpha, rank=rank)
    out = jax.block_until_ready(out)

    # Pure-JAX reference (same math as the PyTorch forward), f32 intermediates.
    scaling = alpha / rank
    ref = (
        x.astype(jnp.float32) @ lora_A.astype(jnp.float32) @ lora_B.astype(jnp.float32)
    ) * scaling

    assert out.shape == (batch, seq, out_features)
    assert out.dtype == x.dtype
    assert jnp.allclose(
        out.astype(jnp.float32), ref, atol=2e-2, rtol=2e-2
    ), "mismatch vs reference"

    print("KERNEL_OK")
</pallas_src>

<mosaic_0001>
module attributes {stable_mosaic.version = 11 : i64} {
  func.func @_lora_kernel(%arg0: i32, %arg1: i32, %arg2: memref<16x128xbf16, #tpu.memory_space<vmem>>, %arg3: memref<128x128xbf16, #tpu.memory_space<vmem>>, %arg4: memref<128x128xbf16, #tpu.memory_space<vmem>>, %arg5: memref<16x128xbf16, #tpu.memory_space<vmem>>, %arg6: memref<16x128xf32, #tpu.memory_space<vmem>>) attributes {dimension_semantics = [#tpu.dimension_semantics<parallel>, #tpu.dimension_semantics<arbitrary>], iteration_bounds = array<i64: 1, 1>, scalar_prefetch = 0 : i64, scratch_operands = 1 : i64, tpu.core_type = #tpu.core_type<tc>, window_params = [{transform_indices = @transform_0, window_bounds = array<i64: 16, 128>}, {pipeline_mode = #tpu.pipeline_mode<synchronous>, transform_indices = @transform_1, window_bounds = array<i64: 128, 128>}, {pipeline_mode = #tpu.pipeline_mode<synchronous>, transform_indices = @transform_2, window_bounds = array<i64: 128, 128>}, {transform_indices = @transform_3, window_bounds = array<i64: 16, 128>}]} {
    %c0_i32 = arith.constant 0 : i32
    %0 = arith.cmpi eq, %arg1, %c0_i32 : i32
    %1 = arith.extui %0 : i1 to i32
    %c0_i32_0 = arith.constant 0 : i32
    %2 = arith.cmpi ne, %1, %c0_i32_0 : i32
    scf.if %2 {
      %cst_10 = arith.constant 0.000000e+00 : f32
      %12 = vector.broadcast %cst_10 : f32 to vector<16x128xf32>
      %c0_11 = arith.constant 0 : index
      %c0_12 = arith.constant 0 : index
      %13 = vector.load %arg6[%c0_11, %c0_12] : memref<16x128xf32, #tpu.memory_space<vmem>>, vector<16x128xf32>
      tpu.vector_store %arg6[%c0_11, %c0_12], %12 {strides = array<i32>} : memref<16x128xf32, #tpu.memory_space<vmem>>, vector<16x128xf32>,
    } else {
    }
    %c0 = arith.constant 0 : index
    %c0_1 = arith.constant 0 : index
    %3 = vector.load %arg6[%c0, %c0_1] : memref<16x128xf32, #tpu.memory_space<vmem>>, vector<16x128xf32>
    %c0_2 = arith.constant 0 : index
    %c0_3 = arith.constant 0 : index
    %4 = vector.load %arg2[%c0_2, %c0_3] : memref<16x128xbf16, #tpu.memory_space<vmem>>, vector<16x128xbf16>
    %c0_4 = arith.constant 0 : index
    %c0_5 = arith.constant 0 : index
    %5 = vector.load %arg3[%c0_4, %c0_5] : memref<128x128xbf16, #tpu.memory_space<vmem>>, vector<128x128xbf16>
    %cst = arith.constant dense<0.000000e+00> : vector<16x128xf32>
    %6 = tpu.matmul %4, %5, %cst {dimension_numbers = #tpu.dot_dimension_numbers<[1], [0], [0], [1], [0, 0, 1, 1], [], []>} : vector<16x128xbf16>, vector<128x128xbf16>, vector<16x128xf32> -> vector<16x128xf32>
    %7 = arith.addf %3, %6 : vector<16x128xf32>
    %c0_6 = arith.constant 0 : index
    %c0_7 = arith.constant 0 : index
    %8 = vector.load %arg6[%c0_6, %c0_7] : memref<16x128xf32, #tpu.memory_space<vmem>>, vector<16x128xf32>
    tpu.vector_store %arg6[%c0_6, %c0_7], %7 {strides = array<i32>} : memref<16x128xf32, #tpu.memory_space<vmem>>, vector<16x128xf32>,
    %c0_i32_8 = arith.constant 0 : i32
    %9 = arith.cmpi eq, %arg1, %c0_i32_8 : i32
    %10 = arith.extui %9 : i1 to i32
    %c0_i32_9 = arith.constant 0 : i32
    %11 = arith.cmpi ne, %10, %c0_i32_9 : i32
    scf.if %11 {
      %c0_10 = arith.constant 0 : index
      %c0_11 = arith.constant 0 : index
      %12 = vector.load %arg6[%c0_10, %c0_11] : memref<16x128xf32, #tpu.memory_space<vmem>>, vector<16x128xf32>
      %cst_12 = arith.constant 2.000000e+00 : f32
      %13 = vector.broadcast %cst_12 : f32 to vector<16x128xf32>
      %14 = arith.mulf %12, %13 : vector<16x128xf32>
      %15 = arith.truncf %14 : vector<16x128xf32> to vector<16x128xbf16>
      %c0_13 = arith.constant 0 : index
      %c0_14 = arith.constant 0 : index
      %16 = vector.load %arg4[%c0_13, %c0_14] : memref<128x128xbf16, #tpu.memory_space<vmem>>, vector<128x128xbf16>
      %cst_15 = arith.constant dense<0.000000e+00> : vector<16x128xf32>
      %17 = tpu.matmul %15, %16, %cst_15 {dimension_numbers = #tpu.dot_dimension_numbers<[1], [0], [0], [1], [0, 0, 1, 1], [], []>} : vector<16x128xbf16>, vector<128x128xbf16>, vector<16x128xf32> -> vector<16x128xf32>
      %18 = arith.truncf %17 : vector<16x128xf32> to vector<16x128xbf16>
      %c0_16 = arith.constant 0 : index
      %c0_17 = arith.constant 0 : index
      %19 = vector.load %arg5[%c0_16, %c0_17] : memref<16x128xbf16, #tpu.memory_space<vmem>>, vector<16x128xbf16>
      tpu.vector_store %arg5[%c0_16, %c0_17], %18 {strides = array<i32>} : memref<16x128xbf16, #tpu.memory_space<vmem>>, vector<16x128xbf16>,
    } else {
    }
    return
  }
  func.func @transform_0(%arg0: i32, %arg1: i32) -> (i32, i32) {
    %c0_i32 = arith.constant 0 : i32
    return %arg0, %arg1 : i32, i32
  }
  func.func @transform_1(%arg0: i32, %arg1: i32) -> (i32, i32) {
    %c0_i32 = arith.constant 0 : i32
    %c0_i32_0 = arith.constant 0 : i32
    return %arg1, %c0_i32 : i32, i32
  }
  func.func @transform_2(%arg0: i32, %arg1: i32) -> (i32, i32) {
    %c0_i32 = arith.constant 0 : i32
    %c0_i32_0 = arith.constant 0 : i32
    %c0_i32_1 = arith.constant 0 : i32
    return %c0_i32, %c0_i32_0 : i32, i32
  }
  func.func @transform_3(%arg0: i32, %arg1: i32) -> (i32, i32) {
    %c0_i32 = arith.constant 0 : i32
    %c0_i32_0 = arith.constant 0 : i32
    return %arg0, %c0_i32 : i32, i32
  }
}

module attributes {stable_mosaic.version = 11 : i64} {
  func.func @_lora_kernel(%arg0: i32, %arg1: i32, %arg2: memref<16x128xbf16, #tpu.memory_space<vmem>>, %arg3: memref<128x128xbf16, #tpu.memory_space<vmem>>, %arg4: memref<128x128xbf16, #tpu.memory_space<vmem>>, %arg5: memref<16x128xbf16, #tpu.memory_space<vmem>>, %arg6: memref<16x128xf32, #tpu.memory_space<vmem>>) attributes {dimension_semantics = [#tpu.dimension_semantics<parallel>, #tpu.dimension_semantics<arbitrary>], iteration_bounds = array<i64: 1, 1>, scalar_prefetch = 0 : i64, scratch_operands = 1 : i64, tpu.core_type = #tpu.core_type<tc>, window_params = [{transform_indices = @transform_0, window_bounds = array<i64: 16, 128>}, {transform_indices = @transform_1, window_bounds = array<i64: 128, 128>}, {pipeline_mode = #tpu.pipeline_mode<synchronous>, transform_indices = @transform_2, window_bounds = array<i64: 128, 128>}, {transform_indices = @transform_3, window_bounds = array<i64: 16, 128>}]} {
    %c0_i32 = arith.constant 0 : i32
    %0 = arith.cmpi eq, %arg1, %c0_i32 : i32
    %1 = arith.extui %0 : i1 to i32
    %c0_i32_0 = arith.constant 0 : i32
    %2 = arith.cmpi ne, %1, %c0_i32_0 : i32
    scf.if %2 {
      %cst_10 = arith.constant 0.000000e+00 : f32
      %12 = vector.broadcast %cst_10 : f32 to vector<16x128xf32>
      %c0_11 = arith.constant 0 : index
      %c0_12 = arith.constant 0 : index
      %13 = vector.load %arg6[%c0_11, %c0_12] : memref<16x128xf32, #tpu.memory_space<vmem>>, vector<16x128xf32>
      tpu.vector_store %arg6[%c0_11, %c0_12], %12 {strides = array<i32>} : memref<16x128xf32, #tpu.memory_space<vmem>>, vector<16x128xf32>,
    } else {
    }
    %c0 = arith.constant 0 : index
    %c0_1 = arith.constant 0 : index
    %3 = vector.load %arg6[%c0, %c0_1] : memref<16x128xf32, #tpu.memory_space<vmem>>, vector<16x128xf32>
    %c0_2 = arith.constant 0 : index
    %c0_3 = arith.constant 0 : index
    %4 = vector.load %arg2[%c0_2, %c0_3] : memref<16x128xbf16, #tpu.memory_space<vmem>>, vector<16x128xbf16>
    %c0_4 = arith.constant 0 : index
    %c0_5 = arith.constant 0 : index
    %5 = vector.load %arg3[%c0_4, %c0_5] : memref<128x128xbf16, #tpu.memory_space<vmem>>, vector<128x128xbf16>
    %cst = arith.constant dense<0.000000e+00> : vector<16x128xf32>
    %6 = tpu.matmul %4, %5, %cst {dimension_numbers = #tpu.dot_dimension_numbers<[1], [0], [0], [1], [0, 0, 1, 1], [], []>} : vector<16x128xbf16>, vector<128x128xbf16>, vector<16x128xf32> -> vector<16x128xf32>
    %7 = arith.addf %3, %6 : vector<16x128xf32>
    %c0_6 = arith.constant 0 : index
    %c0_7 = arith.constant 0 : index
    %8 = vector.load %arg6[%c0_6, %c0_7] : memref<16x128xf32, #tpu.memory_space<vmem>>, vector<16x128xf32>
    tpu.vector_store %arg6[%c0_6, %c0_7], %7 {strides = array<i32>} : memref<16x128xf32, #tpu.memory_space<vmem>>, vector<16x128xf32>,
    %c0_i32_8 = arith.constant 0 : i32
    %9 = arith.cmpi eq, %arg1, %c0_i32_8 : i32
    %10 = arith.extui %9 : i1 to i32
    %c0_i32_9 = arith.constant 0 : i32
    %11 = arith.cmpi ne, %10, %c0_i32_9 : i32
    scf.if %11 {
      %c0_10 = arith.constant 0 : index
      %c0_11 = arith.constant 0 : index
      %12 = vector.load %arg6[%c0_10, %c0_11] : memref<16x128xf32, #tpu.memory_space<vmem>>, vector<16x128xf32>
      %cst_12 = arith.constant 2.000000e+00 : f32
      %13 = vector.broadcast %cst_12 : f32 to vector<16x128xf32>
      %14 = arith.mulf %12, %13 : vector<16x128xf32>
      %15 = arith.truncf %14 : vector<16x128xf32> to vector<16x128xbf16>
      %c0_13 = arith.constant 0 : index
      %c0_14 = arith.constant 0 : index
      %16 = vector.load %arg4[%c0_13, %c0_14] : memref<128x128xbf16, #tpu.memory_space<vmem>>, vector<128x128xbf16>
      %cst_15 = arith.constant dense<0.000000e+00> : vector<16x128xf32>
      %17 = tpu.matmul %15, %16, %cst_15 {dimension_numbers = #tpu.dot_dimension_numbers<[1], [0], [0], [1], [0, 0, 1, 1], [], []>} : vector<16x128xbf16>, vector<128x128xbf16>, vector<16x128xf32> -> vector<16x128xf32>
      %18 = arith.truncf %17 : vector<16x128xf32> to vector<16x128xbf16>
      %c0_16 = arith.constant 0 : index
      %c0_17 = arith.constant 0 : index
      %19 = vector.load %arg5[%c0_16, %c0_17] : memref<16x128xbf16, #tpu.memory_space<vmem>>, vector<16x128xbf16>
      tpu.vector_store %arg5[%c0_16, %c0_17], %18 {strides = array<i32>} : memref<16x128xbf16, #tpu.memory_space<vmem>>, vector<16x128xbf16>,
    } else {
    }
    return
  }
  func.func @transform_0(%arg0: i32, %arg1: i32) -> (i32, i32) {
    %c0_i32 = arith.constant 0 : i32
    return %arg0, %arg1 : i32, i32
  }
  func.func @transform_1(%arg0: i32, %arg1: i32) -> (i32, i32) {
    %c0_i32 = arith.constant 0 : i32
    %c0_i32_0 = arith.constant 0 : i32
    return %arg1, %c0_i32 : i32, i32
  }
  func.func @transform_2(%arg0: i32, %arg1: i32) -> (i32, i32) {
    %c0_i32 = arith.constant 0 : i32
    %c0_i32_0 = arith.constant 0 : i32
    %c0_i32_1 = arith.constant 0 : i32
    return %c0_i32, %c0_i32_0 : i32, i32
  }
  func.func @transform_3(%arg0: i32, %arg1: i32) -> (i32, i32) {
    %c0_i32 = arith.constant 0 : i32
    %c0_i32_0 = arith.constant 0 : i32
    return %arg0, %c0_i32 : i32, i32
  }
}

</mosaic_0001>

<bundles_post_ra>
// kernel: tpu_custom_call.1
= control target key start
LH: loop header
LB: loop body
LE: loop exit
PB: predicated region body
PF: predicated region fallthrough
CT: control target
= control target key end

     0   :  { %8 = vsyncpa [#allocation4], 0  ;;  %s621_s0 = inlined_call_operand.hbm [shape: bf16[16,128], index: 0, kind: input, shape index: {}]   ;;  %s622_s1 = inlined_call_operand.hbm [shape: bf16[128,128], index: 1, kind: input, shape index: {}]   ;;  %s623_s2 = inlined_call_operand.hbm [shape: bf16[128,128], index: 2, kind: input, shape index: {}]   ;;  %s624_s3 = inlined_call_operand.hbm [shape: bf16[16,128], index: 3, kind: output, shape index: {}]  }
   0x1   :  { %9 = vsyncpa [#allocation7], 0 }
   0x2   :  { %10 = vsyncpa [#allocation5], 0  ;;  %s526_s12 = smov [#allocation6]   ;;  %s527_s14 = smov [#allocation3]  }
   0x3   :  { %s28_s13 = sshll.u32 %s526_s12, 4  ;;  %s16_s15 = sshll.u32 %s527_s14, 4  ;;  %s29_s13 = int_to_ptr.vmem [resolvable:$true] %s28_s13  ;;  %s554_s15 = int_to_ptr.vmem [resolvable:$true] %s16_s15 }
   0x4   :  { %s432_s18 = scalar_lea.hbm %s622_s1, 1024 }
   0x5   :  { %p433_p0 = scmp.ne.s32.totalorder %s622_s1, %s432_s18  ;;  %p436_p1 = scmp.lt.u32.totalorder %s432_s18, %s622_s1 }
   0x7   :  { %p438_p2 = pnand %p436_p1, %p433_p0 }
   0x9   :  { %441 = shalt.err (!%p438_p2)
}
   0xa   :  { %s442_s23 = scalar_lea.vmem %s29_s13, 1024  ;;  %p447_p4 = scmp.lt.s32.totalorder %s29_s13, %s29_s13 }
   0xb   :  { %p443_p3 = scmp.ne.s32.totalorder %s29_s13, %s442_s23  ;;  %p448_p5 = scmp.lt.s32.totalorder %s442_s23, %s442_s23 }
   0xd   :  { %p449_p6 = por %p448_p5, %p447_p4 }
   0xf   :  { %p450_p7 = pnand %p449_p6, %p443_p3 }
  0x11   :  { %453 = shalt.err (!%p450_p7)
}
  0x12   :  { %s528_s24 = smov 64   ;;  %s529_s25 = smov 4  }
  0x13   :  { %34 = dma.hbm_to_vmem [thread:$0]  %s622_s1, 1024, %s29_s13, [#allocation7], %s528_s24, %s528_s24, %s529_s25  }
  0x14   :  { %s454_s30 = scalar_lea.hbm %s621_s0, 128 }
  0x15   :  { %p455_p8 = scmp.ne.s32.totalorder %s621_s0, %s454_s30  ;;  %p458_p9 = scmp.lt.u32.totalorder %s454_s30, %s621_s0 }
  0x17   :  { %p460_p10 = pnand %p458_p9, %p455_p8 }
  0x19   :  { %463 = shalt.err (!%p460_p10)
}
  0x1a   :  { %s464_s8 = scalar_lea.vmem %s554_s15, 128  ;;  %p469_p12 = scmp.lt.s32.totalorder %s554_s15, %s554_s15 }
  0x1b   :  { %p465_p11 = scmp.ne.s32.totalorder %s554_s15, %s464_s8  ;;  %p470_p13 = scmp.lt.s32.totalorder %s464_s8, %s464_s8 }
  0x1d   :  { %p471_p0 = por %p470_p13, %p469_p12 }
  0x1f   :  { %p472_p1 = pnand %p471_p0, %p465_p11 }
  0x21   :  { %475 = shalt.err (!%p472_p1)
}
  0x22   :  { %22 = dma.hbm_to_vmem [thread:$0]  %s621_s0, 128, %s554_s15, [#allocation4], %s528_s24, %s528_s24, %s529_s25  }
  0x23   :  { %s530_s10 = smov [#allocation8]   ;;  %s476_s14 = scalar_lea.hbm %s623_s2, 1024 }
  0x24   :  { %s40_s11 = sshll.u32 %s530_s10, 4  ;;  %p477_p2 = scmp.ne.s32.totalorder %s623_s2, %s476_s14  ;;  %s41_s11 = int_to_ptr.vmem [resolvable:$true] %s40_s11 }
  0x25   :  { %p480_p3 = scmp.lt.u32.totalorder %s476_s14, %s623_s2 }
  0x27   :  { %p482_p4 = pnand %p480_p3, %p477_p2 }
  0x29   :  { %485 = shalt.err (!%p482_p4)
}
  0x2a   :  { %s486_s20 = scalar_lea.vmem %s41_s11, 1024  ;;  %p491_p6 = scmp.lt.s32.totalorder %s41_s11, %s41_s11 }
  0x2b   :  { %p487_p5 = scmp.ne.s32.totalorder %s41_s11, %s486_s20  ;;  %p492_p7 = scmp.lt.s32.totalorder %s486_s20, %s486_s20 }
  0x2d   :  { %p493_p8 = por %p492_p7, %p491_p6 }
  0x2f   :  { %p494_p9 = pnand %p493_p8, %p487_p5 }
  0x31   :  { %497 = shalt.err (!%p494_p9)
}
  0x32   :  { %46 = dma.hbm_to_vmem [thread:$0]  %s623_s2, 1024, %s41_s11, [#allocation7], %s528_s24, %s528_s24, %s529_s25  }
  0x33   :  { %520 = dma.done.wait [#allocation4], 128  }
  0x34   :  { %521 = vsyncadd [#allocation4], 4294967168 }
  0x35   :  { %522 = dma.done.wait [#allocation7], 2048  }
  0x36   :  { %523 = vsyncadd [#allocation7], 4294965248  ;;  %v531_v0 = vmov 0.0   ;;  %vm532_vm0 = vmmov 0   ;;  %v415_v1 = vld [vmem:[#allocation6] sm:$0xff]   ;;  %v416_v2 = vld [vmem:[#allocation6 + $0x8] sm:$0xff]  }
  0x37   :  { %367 = vmatprep.subr.bf16.mxu0 %v531_v0  ;;  %383 = vmatprep.mubr.msk.bf16.mxu0 %vm532_vm0, %v531_v0  ;;  %v417_v3 = vld [vmem:[#allocation6 + $0x10] sm:$0xff]   ;;  %v424_v4 = vld [vmem:[#allocation8] sm:$0xff]   ;;  %v418_v5 = vld [vmem:[#allocation6 + $0x18] sm:$0xff]   ;;  %s533_s2 = smov [#allocation9]  }
  0x38   :  { %387 = vmatprep.subr.bf16.mxu1 %v531_v0  ;;  %403 = vmatprep.mubr.msk.bf16.mxu1 %vm532_vm0, %v531_v0  ;;  %v425_v6 = vld [vmem:[#allocation8 + $0x8] sm:$0xff]   ;;  %v419_v7 = vld [vmem:[#allocation6 + $0x20] sm:$0xff]   ;;  %v426_v8 = vld [vmem:[#allocation8 + $0x10] sm:$0xff]   ;;  %s310_s21 = sshll.u32 %s533_s2, 4  ;;  %s311_s21 = int_to_ptr.vmem [resolvable:$true] %s310_s21 }
  0x39   :  { %368 = vmatpush3.bf16.msra.mxu0 %v415_v1  ;;  %388 = vmatpush3.bf16.msra.mxu1 %v424_v4  ;;  %v420_v9 = vld [vmem:[#allocation6 + $0x28] sm:$0xff]   ;;  %v427_v10 = vld [vmem:[#allocation8 + $0x18] sm:$0xff]   ;;  %v421_v11 = vld [vmem:[#allocation6 + $0x30] sm:$0xff]   ;;  %s498_s22 = scalar_lea.vmem %s311_s21, 128  ;;  %p503_p11 = scmp.lt.s32.totalorder %s311_s21, %s311_s21 }
  0x3a   :  { %369 = vmatprep.subr.bf16.mxu0 %v531_v0  ;;  %389 = vmatprep.subr.bf16.mxu1 %v531_v0  ;;  %v428_v12 = vld [vmem:[#allocation8 + $0x20] sm:$0xff]   ;;  %v422_v13 = vld [vmem:[#allocation6 + $0x38] sm:$0xff]   ;;  %v429_v14 = vld [vmem:[#allocation8 + $0x28] sm:$0xff]   ;;  %p499_p10 = scmp.ne.s32.totalorder %s311_s21, %s498_s22  ;;  %p504_p12 = scmp.lt.s32.totalorder %s498_s22, %s498_s22 }
  0x3b   :  { %v423_v15 = vld [vmem:[#allocation3] sm:$0xff]   ;;  %v430_v16 = vld [vmem:[#allocation8 + $0x30] sm:$0xff]  }
  0x3c   :  { %v431_v17 = vld [vmem:[#allocation8 + $0x38] sm:$0xff]   ;;  %p505_p13 = por %p504_p12, %p503_p11 }
  0x3d   :  { %370 = vmatpush3.bf16.msra.mxu0 %v416_v2  ;;  %390 = vmatpush3.bf16.msra.mxu1 %v425_v6 }
  0x3e   :  { %371 = vmatprep.subr.bf16.mxu0 %v531_v0  ;;  %391 = vmatprep.subr.bf16.mxu1 %v531_v0  ;;  %p506_p0 = pnand %p505_p13, %p499_p10 }
  0x41   :  { %372 = vmatpush3.bf16.msra.mxu0 %v417_v3  ;;  %392 = vmatpush3.bf16.msra.mxu1 %v426_v8 }
  0x42   :  { %373 = vmatprep.subr.bf16.mxu0 %v531_v0  ;;  %393 = vmatprep.subr.bf16.mxu1 %v531_v0 }
  0x45   :  { %374 = vmatpush3.bf16.msra.mxu0 %v418_v5  ;;  %394 = vmatpush3.bf16.msra.mxu1 %v427_v10 }
  0x46   :  { %375 = vmatprep.subr.bf16.mxu0 %v531_v0  ;;  %395 = vmatprep.subr.bf16.mxu1 %v531_v0 }
  0x49   :  { %376 = vmatpush3.bf16.msra.mxu0 %v419_v7  ;;  %396 = vmatpush3.bf16.msra.mxu1 %v428_v12 }
  0x4a   :  { %377 = vmatprep.subr.bf16.mxu0 %v531_v0  ;;  %397 = vmatprep.subr.bf16.mxu1 %v531_v0 }
  0x4d   :  { %378 = vmatpush3.bf16.msra.mxu0 %v420_v9  ;;  %398 = vmatpush3.bf16.msra.mxu1 %v429_v14 }
  0x4e   :  { %379 = vmatprep.subr.bf16.mxu0 %v531_v0  ;;  %399 = vmatprep.subr.bf16.mxu1 %v531_v0 }
  0x51   :  { %380 = vmatpush3.bf16.msra.mxu0 %v421_v11  ;;  %400 = vmatpush3.bf16.msra.mxu1 %v430_v16 }
  0x52   :  { %381 = vmatprep.subr.bf16.mxu0 %v531_v0  ;;  %401 = vmatprep.subr.bf16.mxu1 %v531_v0 }
  0x55   :  { %382 = vmatpush3.bf16.msra.mxu0 %v422_v13  ;;  %402 = vmatpush3.bf16.msra.mxu1 %v431_v17 }
  0x58   :  { %384 = vmatmul.mubr.bf16.vlgmr.msra.gmra.mrb[0].mxu0 %v423_v15 }
 0x12b   :  { %v171_v18 = vpop.f32.mrb[0].mxu0 }
 0x12c   :  { %v385_v19 = vpop.f32.mrb[1].mxu0  ;;  %v187_v21 = vmul.f32 2.0, %v171_v18 }
 0x12d   :  { %v174_v20 = vpop.f32.mrb[2].mxu0 }
 0x12e   :  { %v188_v22 = vmul.f32 2.0, %v174_v20  ;;  %v386_v23 = vpop.f32.mrb[3].mxu0 }
 0x130   :  { %v189_v24 = vpack.c.bf16 %v188_v22, %v187_v21 }
 0x132   :  { %404 = vmatmul.mubr.bf16.vlgmr.msra.gmra.mrb[0].mxu1 %v189_v24 }
 0x205   :  { %v288_v25 = vpop.f32.mrb[0].mxu1 }
 0x206   :  { %v405_v26 = vpop.f32.mrb[1].mxu1 }
 0x207   :  { %v291_v27 = vpop.f32.mrb[2].mxu1 }
 0x208   :  { %v347_v28 = vpack.c.bf16 %v291_v27, %v288_v25  ;;  %v406_v29 = vpop.f32.mrb[3].mxu1 }
 0x20a   :  { %348 = vst [vmem:[#allocation9] sm:$0xff] %v347_v28  }
 0x20b   :  { %509 = shalt.err (!%p506_p0)
}
 0x20c   :  { %s510_s27 = scalar_lea.hbm %s624_s3, 128 }
 0x20d   :  { %p511_p1 = scmp.ne.s32.totalorder %s624_s3, %s510_s27  ;;  %p514_p2 = scmp.lt.u32.totalorder %s510_s27, %s624_s3 }
 0x20f   :  { %p516_p3 = pnand %p514_p2, %p511_p1 }
 0x211   :  { %519 = shalt.err (!%p516_p3)
}
 0x212   :  { %316 = dma.vmem_to_hbm [thread:$0]  %s311_s21, 128, %s624_s3, [#allocation5], %s528_s24, %s528_s24, %s529_s25  }
 0x213   :  { %524 = dma.done.wait [#allocation5], 128  }
 0x214   :  { %525 = vsyncadd [#allocation5], 4294967168 }
 0x215   :  { %320 = vsyncpa [#allocation4], 1 }
 0x216   :  { %321 = vsyncpa [#allocation7], 1 }
 0x217   :  { %322 = vsyncpa [#allocation5], 1 }

// kernel: tpu_custom_call.1
= control target key start
LH: loop header
LB: loop body
LE: loop exit
PB: predicated region body
PF: predicated region fallthrough
CT: control target
= control target key end

     0   :  { %8 = vsyncpa [#allocation4], 0  ;;  %s621_s0 = inlined_call_operand.hbm [shape: bf16[16,128], index: 0, kind: input, shape index: {}]   ;;  %s622_s1 = inlined_call_operand.hbm [shape: bf16[128,128], index: 1, kind: input, shape index: {}]   ;;  %s623_s2 = inlined_call_operand.hbm [shape: bf16[128,128], index: 2, kind: input, shape index: {}]   ;;  %s624_s3 = inlined_call_operand.hbm [shape: bf16[16,128], index: 3, kind: output, shape index: {}]  }
   0x1   :  { %9 = vsyncpa [#allocation7], 0 }
   0x2   :  { %10 = vsyncpa [#allocation5], 0  ;;  %s526_s12 = smov [#allocation6]   ;;  %s527_s14 = smov [#allocation3]  }
   0x3   :  { %s28_s13 = sshll.u32 %s526_s12, 4  ;;  %s16_s15 = sshll.u32 %s527_s14, 4  ;;  %s29_s13 = int_to_ptr.vmem [resolvable:$true] %s28_s13  ;;  %s554_s15 = int_to_ptr.vmem [resolvable:$true] %s16_s15 }
   0x4   :  { %s432_s18 = scalar_lea.hbm %s622_s1, 1024 }
   0x5   :  { %p433_p0 = scmp.ne.s32.totalorder %s622_s1, %s432_s18  ;;  %p436_p1 = scmp.lt.u32.totalorder %s432_s18, %s622_s1 }
   0x7   :  { %p438_p2 = pnand %p436_p1, %p433_p0 }
   0x9   :  { %441 = shalt.err (!%p438_p2)
}
   0xa   :  { %s442_s23 = scalar_lea.vmem %s29_s13, 1024  ;;  %p447_p4 = scmp.lt.s32.totalorder %s29_s13, %s29_s13 }
   0xb   :  { %p443_p3 = scmp.ne.s32.totalorder %s29_s13, %s442_s23  ;;  %p448_p5 = scmp.lt.s32.totalorder %s442_s23, %s442_s23 }
   0xd   :  { %p449_p6 = por %p448_p5, %p447_p4 }
   0xf   :  { %p450_p7 = pnand %p449_p6, %p443_p3 }
  0x11   :  { %453 = shalt.err (!%p450_p7)
}
  0x12   :  { %s528_s24 = smov 64   ;;  %s529_s25 = smov 4  }
  0x13   :  { %34 = dma.hbm_to_vmem [thread:$0]  %s622_s1, 1024, %s29_s13, [#allocation7], %s528_s24, %s528_s24, %s529_s25  }
  0x14   :  { %s454_s30 = scalar_lea.hbm %s621_s0, 128 }
  0x15   :  { %p455_p8 = scmp.ne.s32.totalorder %s621_s0, %s454_s30  ;;  %p458_p9 = scmp.lt.u32.totalorder %s454_s30, %s621_s0 }
  0x17   :  { %p460_p10 = pnand %p458_p9, %p455_p8 }
  0x19   :  { %463 = shalt.err (!%p460_p10)
}
  0x1a   :  { %s464_s8 = scalar_lea.vmem %s554_s15, 128  ;;  %p469_p12 = scmp.lt.s32.totalorder %s554_s15, %s554_s15 }
  0x1b   :  { %p465_p11 = scmp.ne.s32.totalorder %s554_s15, %s464_s8  ;;  %p470_p13 = scmp.lt.s32.totalorder %s464_s8, %s464_s8 }
  0x1d   :  { %p471_p0 = por %p470_p13, %p469_p12 }
  0x1f   :  { %p472_p1 = pnand %p471_p0, %p465_p11 }
  0x21   :  { %475 = shalt.err (!%p472_p1)
}
  0x22   :  { %22 = dma.hbm_to_vmem [thread:$0]  %s621_s0, 128, %s554_s15, [#allocation4], %s528_s24, %s528_s24, %s529_s25  }
  0x23   :  { %s530_s10 = smov [#allocation8]   ;;  %s476_s14 = scalar_lea.hbm %s623_s2, 1024 }
  0x24   :  { %s40_s11 = sshll.u32 %s530_s10, 4  ;;  %p477_p2 = scmp.ne.s32.totalorder %s623_s2, %s476_s14  ;;  %s41_s11 = int_to_ptr.vmem [resolvable:$true] %s40_s11 }
  0x25   :  { %p480_p3 = scmp.lt.u32.totalorder %s476_s14, %s623_s2 }
  0x27   :  { %p482_p4 = pnand %p480_p3, %p477_p2 }
  0x29   :  { %485 = shalt.err (!%p482_p4)
}
  0x2a   :  { %s486_s20 = scalar_lea.vmem %s41_s11, 1024  ;;  %p491_p6 = scmp.lt.s32.totalorder %s41_s11, %s41_s11 }
  0x2b   :  { %p487_p5 = scmp.ne.s32.totalorder %s41_s11, %s486_s20  ;;  %p492_p7 = scmp.lt.s32.totalorder %s486_s20, %s486_s20 }
  0x2d   :  { %p493_p8 = por %p492_p7, %p491_p6 }
  0x2f   :  { %p494_p9 = pnand %p493_p8, %p487_p5 }
  0x31   :  { %497 = shalt.err (!%p494_p9)
}
  0x32   :  { %46 = dma.hbm_to_vmem [thread:$0]  %s623_s2, 1024, %s41_s11, [#allocation7], %s528_s24, %s528_s24, %s529_s25  }
  0x33   :  { %520 = dma.done.wait [#allocation4], 128  }
  0x34   :  { %521 = vsyncadd [#allocation4], 4294967168 }
  0x35   :  { %522 = dma.done.wait [#allocation7], 2048  }
  0x36   :  { %523 = vsyncadd [#allocation7], 4294965248  ;;  %v531_v0 = vmov 0.0   ;;  %vm532_vm0 = vmmov 0   ;;  %v415_v1 = vld [vmem:[#allocation6] sm:$0xff]   ;;  %v416_v2 = vld [vmem:[#allocation6 + $0x8] sm:$0xff]  }
  0x37   :  { %367 = vmatprep.subr.bf16.mxu0 %v531_v0  ;;  %383 = vmatprep.mubr.msk.bf16.mxu0 %vm532_vm0, %v531_v0  ;;  %v417_v3 = vld [vmem:[#allocation6 + $0x10] sm:$0xff]   ;;  %v424_v4 = vld [vmem:[#allocation8] sm:$0xff]   ;;  %v418_v5 = vld [vmem:[#allocation6 + $0x18] sm:$0xff]   ;;  %s533_s2 = smov [#allocation9]  }
  0x38   :  { %387 = vmatprep.subr.bf16.mxu1 %v531_v0  ;;  %403 = vmatprep.mubr.msk.bf16.mxu1 %vm532_vm0, %v531_v0  ;;  %v425_v6 = vld [vmem:[#allocation8 + $0x8] sm:$0xff]   ;;  %v419_v7 = vld [vmem:[#allocation6 + $0x20] sm:$0xff]   ;;  %v426_v8 = vld [vmem:[#allocation8 + $0x10] sm:$0xff]   ;;  %s310_s21 = sshll.u32 %s533_s2, 4  ;;  %s311_s21 = int_to_ptr.vmem [resolvable:$true] %s310_s21 }
  0x39   :  { %368 = vmatpush3.bf16.msra.mxu0 %v415_v1  ;;  %388 = vmatpush3.bf16.msra.mxu1 %v424_v4  ;;  %v420_v9 = vld [vmem:[#allocation6 + $0x28] sm:$0xff]   ;;  %v427_v10 = vld [vmem:[#allocation8 + $0x18] sm:$0xff]   ;;  %v421_v11 = vld [vmem:[#allocation6 + $0x30] sm:$0xff]   ;;  %s498_s22 = scalar_lea.vmem %s311_s21, 128  ;;  %p503_p11 = scmp.lt.s32.totalorder %s311_s21, %s311_s21 }
  0x3a   :  { %369 = vmatprep.subr.bf16.mxu0 %v531_v0  ;;  %389 = vmatprep.subr.bf16.mxu1 %v531_v0  ;;  %v428_v12 = vld [vmem:[#allocation8 + $0x20] sm:$0xff]   ;;  %v422_v13 = vld [vmem:[#allocation6 + $0x38] sm:$0xff]   ;;  %v429_v14 = vld [vmem:[#allocation8 + $0x28] sm:$0xff]   ;;  %p499_p10 = scmp.ne.s32.totalorder %s311_s21, %s498_s22  ;;  %p504_p12 = scmp.lt.s32.totalorder %s498_s22, %s498_s22 }
  0x3b   :  { %v423_v15 = vld [vmem:[#allocation3] sm:$0xff]   ;;  %v430_v16 = vld [vmem:[#allocation8 + $0x30] sm:$0xff]  }
  0x3c   :  { %v431_v17 = vld [vmem:[#allocation8 + $0x38] sm:$0xff]   ;;  %p505_p13 = por %p504_p12, %p503_p11 }
  0x3d   :  { %370 = vmatpush3.bf16.msra.mxu0 %v416_v2  ;;  %390 = vmatpush3.bf16.msra.mxu1 %v425_v6 }
  0x3e   :  { %371 = vmatprep.subr.bf16.mxu0 %v531_v0  ;;  %391 = vmatprep.subr.bf16.mxu1 %v531_v0  ;;  %p506_p0 = pnand %p505_p13, %p499_p10 }
  0x41   :  { %372 = vmatpush3.bf16.msra.mxu0 %v417_v3  ;;  %392 = vmatpush3.bf16.msra.mxu1 %v426_v8 }
  0x42   :  { %373 = vmatprep.subr.bf16.mxu0 %v531_v0  ;;  %393 = vmatprep.subr.bf16.mxu1 %v531_v0 }
  0x45   :  { %374 = vmatpush3.bf16.msra.mxu0 %v418_v5  ;;  %394 = vmatpush3.bf16.msra.mxu1 %v427_v10 }
  0x46   :  { %375 = vmatprep.subr.bf16.mxu0 %v531_v0  ;;  %395 = vmatprep.subr.bf16.mxu1 %v531_v0 }
  0x49   :  { %376 = vmatpush3.bf16.msra.mxu0 %v419_v7  ;;  %396 = vmatpush3.bf16.msra.mxu1 %v428_v12 }
  0x4a   :  { %377 = vmatprep.subr.bf16.mxu0 %v531_v0  ;;  %397 = vmatprep.subr.bf16.mxu1 %v531_v0 }
  0x4d   :  { %378 = vmatpush3.bf16.msra.mxu0 %v420_v9  ;;  %398 = vmatpush3.bf16.msra.mxu1 %v429_v14 }
  0x4e   :  { %379 = vmatprep.subr.bf16.mxu0 %v531_v0  ;;  %399 = vmatprep.subr.bf16.mxu1 %v531_v0 }
  0x51   :  { %380 = vmatpush3.bf16.msra.mxu0 %v421_v11  ;;  %400 = vmatpush3.bf16.msra.mxu1 %v430_v16 }
  0x52   :  { %381 = vmatprep.subr.bf16.mxu0 %v531_v0  ;;  %401 = vmatprep.subr.bf16.mxu1 %v531_v0 }
  0x55   :  { %382 = vmatpush3.bf16.msra.mxu0 %v422_v13  ;;  %402 = vmatpush3.bf16.msra.mxu1 %v431_v17 }
  0x58   :  { %384 = vmatmul.mubr.bf16.vlgmr.msra.gmra.mrb[0].mxu0 %v423_v15 }
 0x12b   :  { %v171_v18 = vpop.f32.mrb[0].mxu0 }
 0x12c   :  { %v385_v19 = vpop.f32.mrb[1].mxu0  ;;  %v187_v21 = vmul.f32 2.0, %v171_v18 }
 0x12d   :  { %v174_v20 = vpop.f32.mrb[2].mxu0 }
 0x12e   :  { %v188_v22 = vmul.f32 2.0, %v174_v20  ;;  %v386_v23 = vpop.f32.mrb[3].mxu0 }
 0x130   :  { %v189_v24 = vpack.c.bf16 %v188_v22, %v187_v21 }
 0x132   :  { %404 = vmatmul.mubr.bf16.vlgmr.msra.gmra.mrb[0].mxu1 %v189_v24 }
 0x205   :  { %v288_v25 = vpop.f32.mrb[0].mxu1 }
 0x206   :  { %v405_v26 = vpop.f32.mrb[1].mxu1 }
 0x207   :  { %v291_v27 = vpop.f32.mrb[2].mxu1 }
 0x208   :  { %v347_v28 = vpack.c.bf16 %v291_v27, %v288_v25  ;;  %v406_v29 = vpop.f32.mrb[3].mxu1 }
 0x20a   :  { %348 = vst [vmem:[#allocation9] sm:$0xff] %v347_v28  }
 0x20b   :  { %509 = shalt.err (!%p506_p0)
}
 0x20c   :  { %s510_s27 = scalar_lea.hbm %s624_s3, 128 }
 0x20d   :  { %p511_p1 = scmp.ne.s32.totalorder %s624_s3, %s510_s27  ;;  %p514_p2 = scmp.lt.u32.totalorder %s510_s27, %s624_s3 }
 0x20f   :  { %p516_p3 = pnand %p514_p2, %p511_p1 }
 0x211   :  { %519 = shalt.err (!%p516_p3)
}
 0x212   :  { %316 = dma.vmem_to_hbm [thread:$0]  %s311_s21, 128, %s624_s3, [#allocation5], %s528_s24, %s528_s24, %s529_s25  }
 0x213   :  { %524 = dma.done.wait [#allocation5], 128  }
 0x214   :  { %525 = vsyncadd [#allocation5], 4294967168 }
 0x215   :  { %320 = vsyncpa [#allocation4], 1 }
 0x216   :  { %321 = vsyncpa [#allocation7], 1 }
 0x217   :  { %322 = vsyncpa [#allocation5], 1 }

</bundles_post_ra>
